<compile_context>
chip_gen: v7x
topology: tpu7x:2x2x1
jax: 0.10.0
libtpu: 0.0.40
codegen_flags: <defaults>
</compile_context>

<pallas_src>
import functools

import jax
import jax.numpy as jnp
from jax.experimental import pallas as pl
from jax.experimental.pallas import tpu as pltpu


def _round_up(x, m):
    return ((x + m - 1) // m) * m


MAX_TK = 2048          # K tile upper bound (multiple of 128)
TM_MAX = 256           # M tile upper bound


def _plan_k(K):
    """Choose (tk, Kp) so Kp = tk * ksteps >= K, tk <= MAX_TK, tk % 128 == 0."""
    k0 = _round_up(K, 128)
    ksteps = -(-k0 // MAX_TK)
    tk = _round_up(-(-K // ksteps), 128)
    return tk, tk * ksteps


# ----------------------------------------------------------------------------
# Pallas kernel: (M,K)@(K,N) + bias + fused activation, accumulate into o_ref
# ----------------------------------------------------------------------------
def _matmul_bias_act_kernel(a_ref, b_ref, bias_ref, o_ref, *, activation):
    k = pl.program_id(1)

    @pl.when(k == 0)
    def _():
        o_ref[...] = jnp.zeros_like(o_ref)

    o_ref[...] += jnp.dot(a_ref[...], b_ref[...],
                          preferred_element_type=jnp.float32)

    @pl.when(k == pl.num_programs(1) - 1)
    def _():
        r = o_ref[...] + bias_ref[...]
        if activation == "relu":
            r = jnp.maximum(r, 0.0)
        elif activation == "tanh":
            r = jnp.tanh(r)
        o_ref[...] = r


def matmul_bias_act(a, wp, activation):
    """a: (M, K) f32; wp: prepped weights (bf16 (Kp, N) + f32 (1, N) bias + tk)."""
    M, K = a.shape
    b_p, bias_p, tk = wp["b"], wp["bias"], wp["tk"]
    Kp, N = b_p.shape
    assert wp["K"] == K

    Mp0 = _round_up(max(M, 8), 8)
    tm = min(Mp0, TM_MAX)
    Mp = _round_up(Mp0, tm)

    a_p = jnp.pad(a.astype(jnp.bfloat16), ((0, Mp - M), (0, Kp - K)))
    grid = (Mp // tm, Kp // tk)

    out = pl.pallas_call(
        functools.partial(_matmul_bias_act_kernel, activation=activation),
        out_shape=jax.ShapeDtypeStruct((Mp, N), jnp.float32),
        grid_spec=pltpu.PrefetchScalarGridSpec(
            num_scalar_prefetch=0,
            grid=grid,
            in_specs=[
                pl.BlockSpec((tm, tk), lambda m, k: (m, k)),   # A tile
                pl.BlockSpec((tk, N), lambda m, k: (k, 0)),    # B tile (full N)
                pl.BlockSpec((1, N), lambda m, k: (0, 0)),     # bias
            ],
            out_specs=pl.BlockSpec((tm, N), lambda m, k: (m, 0)),
        ),
        compiler_params=pltpu.CompilerParams(
            dimension_semantics=("parallel", "arbitrary"),
            vmem_limit_bytes=32 * 1024 * 1024,
        ),
    )(a_p, b_p, bias_p)
    return out[:M, :N]


# ----------------------------------------------------------------------------
# One-time weight preparation (hoisted out of the per-call path)
# ----------------------------------------------------------------------------
def prep_matmul_B(bmat, bias):
    """bmat: (K, N) f32 -> bf16 padded (Kp, N); bias: (N,) -> (1, N) f32."""
    K, N = bmat.shape
    tk, Kp = _plan_k(K)
    b_p = jnp.pad(bmat.astype(jnp.bfloat16), ((0, Kp - K), (0, 0)))
    bias_p = bias.astype(jnp.float32).reshape(1, N)
    return {"b": b_p, "bias": bias_p, "tk": tk, "K": K}


def prep_conv2d(w, bias):
    """w: (OC, C, KH, KW) -> B matrix (C*KH*KW, OC)."""
    OC = w.shape[0]
    return prep_matmul_B(w.reshape(OC, -1).T, bias)


def prep_conv3d_grouped(w, bias, groups):
    """w: (OC, C//g, KD, KH, KW) -> block-diagonal B matrix (C*KD*KH*KW, OC)
    so both groups run in a single pallas_call."""
    OC, Cg, KD, KH, KW = w.shape
    OCg = OC // groups
    Kg = Cg * KD * KH * KW
    K = groups * Kg
    bmat = jnp.zeros((K, OC), jnp.float32)
    for g in range(groups):
        wg = w[g * OCg:(g + 1) * OCg].reshape(OCg, Kg).T       # (Kg, OCg)
        bmat = bmat.at[g * Kg:(g + 1) * Kg, g * OCg:(g + 1) * OCg].set(wg)
    return prep_matmul_B(bmat, bias)


# ----------------------------------------------------------------------------
# Convolution wrappers (im2col glue in plain JAX, matmul hot path in Pallas)
# ----------------------------------------------------------------------------
def conv2d_1x1_act(x, wp, activation):
    """x: (N, C, H, W); 1x1 conv = per-pixel matmul in NHWC."""
    N, C, H, W = x.shape
    a = x.transpose(0, 2, 3, 1).reshape(N * H * W, C)
    out = matmul_bias_act(a, wp, activation)
    OC = out.shape[1]
    return out.reshape(N, H, W, OC).transpose(0, 3, 1, 2)


def conv2d_act(x, wp, kernel, stride, padding, dilation, activation):
    """General 2-D conv via im2col. x: (N, C, H, W)."""
    N, C, H, W = x.shape
    KH = KW = kernel
    xp = jnp.pad(x, ((0, 0), (0, 0), (padding, padding), (padding, padding)))
    Hp, Wp = H + 2 * padding, W + 2 * padding
    OH = (Hp - (dilation * (KH - 1) + 1)) // stride + 1
    OW = (Wp - (dilation * (KW - 1) + 1)) // stride + 1

    rows = jnp.arange(OH)[:, None] * stride + jnp.arange(KH)[None, :] * dilation
    cols = jnp.arange(OW)[:, None] * stride + jnp.arange(KW)[None, :] * dilation
    # (N, C, OH, KH, OW, KW)
    patches = xp[:, :, rows[:, :, None, None], cols[None, None, :, :]]
    patches = patches.transpose(0, 2, 4, 1, 3, 5)  # (N, OH, OW, C, KH, KW)
    a = patches.reshape(N * OH * OW, C * KH * KW)
    out = matmul_bias_act(a, wp, activation)
    OC = out.shape[1]
    return out.reshape(N, OH, OW, OC).transpose(0, 3, 1, 2)


def conv3d_grouped_act(x, wp, kernel, stride, dilation, activation):
    """Grouped 3-D conv via im2col + block-diagonal weight (single kernel call).
    x: (N, C, D, H, W)."""
    N, C, D, H, W = x.shape
    KD = KH = KW = kernel
    OD = (D - (dilation * (KD - 1) + 1)) // stride + 1
    OH = (H - (dilation * (KH - 1) + 1)) // stride + 1
    OW = (W - (dilation * (KW - 1) + 1)) // stride + 1

    d_idx = jnp.arange(OD)[:, None] * stride + jnp.arange(KD)[None, :] * dilation
    h_idx = jnp.arange(OH)[:, None] * stride + jnp.arange(KH)[None, :] * dilation
    w_idx = jnp.arange(OW)[:, None] * stride + jnp.arange(KW)[None, :] * dilation

    # (N, C, OD, KD, OH, KH, OW, KW)
    patches = x[:, :,
                d_idx[:, :, None, None, None, None],
                h_idx[None, None, :, :, None, None],
                w_idx[None, None, None, None, :, :]]
    patches = patches.transpose(0, 2, 4, 6, 1, 3, 5, 7)  # (N,OD,OH,OW,C,KD,KH,KW)
    a = patches.reshape(N * OD * OH * OW, C * KD * KH * KW)
    out = matmul_bias_act(a, wp, activation)
    OC = out.shape[1]
    return out.reshape(N, OD, OH, OW, OC).transpose(0, 4, 1, 2, 3)


# ----------------------------------------------------------------------------
# ModelTanh stages (parameters initialized deterministically in-script)
# ----------------------------------------------------------------------------
def make_params(key):
    ks = jax.random.split(key, 6)
    # conv:  Conv2d(77, 109, 1, stride=1)
    w1 = 0.05 * jax.random.normal(ks[0], (109, 77, 1, 1), jnp.float32)
    b1 = 0.01 * jax.random.normal(ks[1], (109,), jnp.float32)
    # conv2: Conv2d(97, 82, 21, stride=18, padding=12, dilation=14)
    w2 = 0.01 * jax.random.normal(ks[2], (82, 97, 21, 21), jnp.float32)
    b2 = 0.01 * jax.random.normal(ks[3], (82,), jnp.float32)
    # conv3: Conv3d(8, 40, 7, stride=3, dilation=10, groups=2)
    w3 = 0.01 * jax.random.normal(ks[4], (40, 4, 7, 7, 7), jnp.float32)
    b3 = 0.01 * jax.random.normal(ks[5], (40,), jnp.float32)
    return {
        "conv1": prep_conv2d(w1, b1),
        "conv2": prep_conv2d(w2, b2),
        "conv3": prep_conv3d_grouped(w3, b3, groups=2),
    }


def stage1(x, p):  # v1 = conv(x); v2 = relu(v1)
    return conv2d_1x1_act(x, p["conv1"], "relu")


def stage2(x, p):  # v3 = conv2(x); v4 = relu(v3)
    return conv2d_act(x, p["conv2"], kernel=21, stride=18, padding=12,
                      dilation=14, activation="relu")


def stage3(x, p):  # v5 = conv3(x); v6 = tanh(v5)
    return conv3d_grouped_act(x, p["conv3"], kernel=7, stride=3, dilation=10,
                              activation="tanh")


if __name__ == "__main__":
    key = jax.random.PRNGKey(0)
    pkey, k1, k2, k3 = jax.random.split(key, 4)
    params = make_params(pkey)

    # Minimal valid inputs per stage (see TODO(synk): the stages cannot be chained
    # because the original module's channel/rank requirements conflict).
    x1 = jax.random.normal(k1, (2, 77, 8, 8), jnp.float32)          # -> (2, 109, 8, 8)
    x2 = jax.random.normal(k2, (1, 97, 257, 257), jnp.float32)      # -> (1, 82, 1, 1)
    x3 = jax.random.normal(k3, (1, 8, 61, 61, 61), jnp.float32)     # -> (1, 40, 1, 1, 1)

    y1 = jax.block_until_ready(stage1(x1, params))
    y2 = jax.block_until_ready(stage2(x2, params))
    y3 = jax.block_until_ready(stage3(x3, params))

    assert y1.shape == (2, 109, 8, 8)
    assert y2.shape == (1, 82, 1, 1)
    assert y3.shape == (1, 40, 1, 1, 1)

    print("KERNEL_OK")
</pallas_src>

<mosaic_0001>
module attributes {stable_mosaic.version = 11 : i64} {
  func.func @_matmul_bias_act_kernel(%arg0: i32, %arg1: i32, %arg2: memref<128x128xbf16, #tpu.memory_space<vmem>>, %arg3: memref<128x109xbf16, #tpu.memory_space<vmem>>, %arg4: memref<1x109xf32, #tpu.memory_space<vmem>>, %arg5: memref<128x109xf32, #tpu.memory_space<vmem>>) attributes {dimension_semantics = [#tpu.dimension_semantics<parallel>, #tpu.dimension_semantics<arbitrary>], iteration_bounds = array<i64: 1, 1>, scalar_prefetch = 0 : i64, scratch_operands = 0 : i64, tpu.core_type = #tpu.core_type<tc>, window_params = [{transform_indices = @transform_0, window_bounds = array<i64: 128, 128>}, {transform_indices = @transform_1, window_bounds = array<i64: 128, 109>}, {pipeline_mode = #tpu.pipeline_mode<synchronous>, transform_indices = @transform_2, window_bounds = array<i64: 1, 109>}, {transform_indices = @transform_3, window_bounds = array<i64: 128, 109>}]} {
    %c0_i32 = arith.constant 0 : i32
    %0 = arith.cmpi eq, %arg1, %c0_i32 : i32
    %1 = arith.extui %0 : i1 to i32
    %c0_i32_0 = arith.constant 0 : i32
    %2 = arith.cmpi ne, %1, %c0_i32_0 : i32
    scf.if %2 {
      %cst_10 = arith.constant 0.000000e+00 : f32
      %12 = vector.broadcast %cst_10 : f32 to vector<128x109xf32>
      %c0_11 = arith.constant 0 : index
      %c0_12 = arith.constant 0 : index
      %13 = vector.load %arg5[%c0_11, %c0_12] : memref<128x109xf32, #tpu.memory_space<vmem>>, vector<128x109xf32>
      tpu.vector_store %arg5[%c0_11, %c0_12], %12 {strides = array<i32>} : memref<128x109xf32, #tpu.memory_space<vmem>>, vector<128x109xf32>,
    } else {
    }
    %c0 = arith.constant 0 : index
    %c0_1 = arith.constant 0 : index
    %3 = vector.load %arg5[%c0, %c0_1] : memref<128x109xf32, #tpu.memory_space<vmem>>, vector<128x109xf32>
    %c0_2 = arith.constant 0 : index
    %c0_3 = arith.constant 0 : index
    %4 = vector.load %arg2[%c0_2, %c0_3] : memref<128x128xbf16, #tpu.memory_space<vmem>>, vector<128x128xbf16>
    %c0_4 = arith.constant 0 : index
    %c0_5 = arith.constant 0 : index
    %5 = vector.load %arg3[%c0_4, %c0_5] : memref<128x109xbf16, #tpu.memory_space<vmem>>, vector<128x109xbf16>
    %cst = arith.constant dense<0.000000e+00> : vector<128x109xf32>
    %6 = tpu.matmul %4, %5, %cst {dimension_numbers = #tpu.dot_dimension_numbers<[1], [0], [0], [1], [0, 0, 1, 1], [], []>} : vector<128x128xbf16>, vector<128x109xbf16>, vector<128x109xf32> -> vector<128x109xf32>
    %7 = arith.addf %3, %6 : vector<128x109xf32>
    %c0_6 = arith.constant 0 : index
    %c0_7 = arith.constant 0 : index
    %8 = vector.load %arg5[%c0_6, %c0_7] : memref<128x109xf32, #tpu.memory_space<vmem>>, vector<128x109xf32>
    tpu.vector_store %arg5[%c0_6, %c0_7], %7 {strides = array<i32>} : memref<128x109xf32, #tpu.memory_space<vmem>>, vector<128x109xf32>,
    %c0_i32_8 = arith.constant 0 : i32
    %9 = arith.cmpi eq, %arg1, %c0_i32_8 : i32
    %10 = arith.extui %9 : i1 to i32
    %c0_i32_9 = arith.constant 0 : i32
    %11 = arith.cmpi ne, %10, %c0_i32_9 : i32
    scf.if %11 {
      %c0_10 = arith.constant 0 : index
      %c0_11 = arith.constant 0 : index
      %12 = vector.load %arg5[%c0_10, %c0_11] : memref<128x109xf32, #tpu.memory_space<vmem>>, vector<128x109xf32>
      %c0_12 = arith.constant 0 : index
      %c0_13 = arith.constant 0 : index
      %13 = vector.load %arg4[%c0_12, %c0_13] : memref<1x109xf32, #tpu.memory_space<vmem>>, vector<1x109xf32>
      %14 = vector.broadcast %13 : vector<1x109xf32> to vector<128x109xf32>
      %15 = arith.addf %12, %14 : vector<128x109xf32>
      %cst_14 = arith.constant 0.000000e+00 : f32
      %16 = vector.broadcast %cst_14 : f32 to vector<128x109xf32>
      %17 = arith.maximumf %15, %16 : vector<128x109xf32>
      %c0_15 = arith.constant 0 : index
      %c0_16 = arith.constant 0 : index
      %18 = vector.load %arg5[%c0_15, %c0_16] : memref<128x109xf32, #tpu.memory_space<vmem>>, vector<128x109xf32>
      tpu.vector_store %arg5[%c0_15, %c0_16], %17 {strides = array<i32>} : memref<128x109xf32, #tpu.memory_space<vmem>>, vector<128x109xf32>,
    } else {
    }
    return
  }
  func.func @transform_0(%arg0: i32, %arg1: i32) -> (i32, i32) {
    %c0_i32 = arith.constant 0 : i32
    return %arg0, %arg1 : i32, i32
  }
  func.func @transform_1(%arg0: i32, %arg1: i32) -> (i32, i32) {
    %c0_i32 = arith.constant 0 : i32
    %c0_i32_0 = arith.constant 0 : i32
    return %arg1, %c0_i32 : i32, i32
  }
  func.func @transform_2(%arg0: i32, %arg1: i32) -> (i32, i32) {
    %c0_i32 = arith.constant 0 : i32
    %c0_i32_0 = arith.constant 0 : i32
    %c0_i32_1 = arith.constant 0 : i32
    return %c0_i32, %c0_i32_0 : i32, i32
  }
  func.func @transform_3(%arg0: i32, %arg1: i32) -> (i32, i32) {
    %c0_i32 = arith.constant 0 : i32
    %c0_i32_0 = arith.constant 0 : i32
    return %arg0, %c0_i32 : i32, i32
  }
}

</mosaic_0001>

<bundles_post_ra>
// kernel: tpu_custom_call.1
= control target key start
LH: loop header
LB: loop body
LE: loop exit
PB: predicated region body
PF: predicated region fallthrough
CT: control target
= control target key end

     0   :  { %vm19_vm0 = vcmask 891904   ;;  %v486_v1 = vmov 0.0   ;;  %s864_s1 = inlined_call_operand.vmem [shape: bf16[128,109], index: 1, kind: input, shape index: {}]   ;;  %s865_s3 = inlined_call_operand.vmem [shape: f32[128,109], index: 3, kind: output, shape index: {}]   ;;  %s866_s0 = inlined_call_operand.vmem [shape: bf16[128,128], index: 0, kind: input, shape index: {}]   ;;  %s867_s2 = inlined_call_operand.vmem [shape: f32[1,109], index: 2, kind: input, shape index: {}]  }
   0x1   :  { %v470_v0 = vld [vmem:[%s864_s1] sm:$0xff]   ;;  %22 = vst.msk [vmem:[%s865_s3 + $0x10] sm:$0xff] %vm19_vm0, %v486_v1  ;;  %20 = vst.msk [vmem:[%s865_s3] sm:$0xff] %vm19_vm0, %v486_v1  ;;  %v471_v2 = vld [vmem:[%s864_s1 + $0x8] sm:$0xff]  }
   0x2   :  { %21 = vst.msk [vmem:[%s865_s3 + $0x8] sm:$0xff] %vm19_vm0, %v486_v1  ;;  %23 = vst.msk [vmem:[%s865_s3 + $0x18] sm:$0xff] %vm19_vm0, %v486_v1  ;;  %421 = vmatprep.subr.bf16.mxu0 %v470_v0  ;;  %453 = vmatprep.subr.bf16.mxu1 %v470_v0  ;;  %v472_v3 = vld [vmem:[%s864_s1 + $0x10] sm:$0xff]   ;;  %v473_v4 = vld [vmem:[%s864_s1 + $0x18] sm:$0xff]  }
   0x3   :  { %24 = vst.msk [vmem:[%s865_s3 + $0x20] sm:$0xff] %vm19_vm0, %v486_v1  ;;  %25 = vst.msk [vmem:[%s865_s3 + $0x28] sm:$0xff] %vm19_vm0, %v486_v1  ;;  %422 = vmatpush3.bf16.msra.mxu0 %v470_v0  ;;  %461 = vmatpush3.bf16.msra.mxu1 %v470_v0  ;;  %v478_v5 = vld [vmem:[%s866_s0] sm:$0xff]   ;;  %v475_v8 = vld [vmem:[%s864_s1 + $0x28] sm:$0xff]  }
   0x4   :  { %26 = vst.msk [vmem:[%s865_s3 + $0x30] sm:$0xff] %vm19_vm0, %v486_v1  ;;  %27 = vst.msk [vmem:[%s865_s3 + $0x38] sm:$0xff] %vm19_vm0, %v486_v1  ;;  %423 = vmatprep.subr.bf16.mxu0 %v471_v2  ;;  %454 = vmatprep.subr.bf16.mxu1 %v471_v2  ;;  %v479_v6 = vld [vmem:[%s866_s0 + $0x20] sm:$0xff]   ;;  %v476_v9 = vld [vmem:[%s864_s1 + $0x30] sm:$0xff]  }
   0x5   :  { %28 = vst.msk [vmem:[%s865_s3 + $0x40] sm:$0xff] %vm19_vm0, %v486_v1  ;;  %29 = vst.msk [vmem:[%s865_s3 + $0x48] sm:$0xff] %vm19_vm0, %v486_v1  ;;  %437 = vmatprep.mubr.bf16.mxu0 %v478_v5  ;;  %v474_v7 = vld [vmem:[%s864_s1 + $0x20] sm:$0xff]   ;;  %445 = vmatprep.mubr.bf16.mxu1 %v479_v6  ;;  %v477_v10 = vld [vmem:[%s864_s1 + $0x38] sm:$0xff]  }
   0x6   :  { %30 = vst.msk [vmem:[%s865_s3 + $0x50] sm:$0xff] %vm19_vm0, %v486_v1  ;;  %31 = vst.msk [vmem:[%s865_s3 + $0x58] sm:$0xff] %vm19_vm0, %v486_v1  ;;  %v480_v11 = vld [vmem:[%s866_s0 + $0x8] sm:$0xff]   ;;  %v482_v13 = vld [vmem:[%s866_s0 + $0x10] sm:$0xff]  }
   0x7   :  { %32 = vst.msk [vmem:[%s865_s3 + $0x60] sm:$0xff] %vm19_vm0, %v486_v1  ;;  %33 = vst.msk [vmem:[%s865_s3 + $0x68] sm:$0xff] %vm19_vm0, %v486_v1  ;;  %424 = vmatpush3.bf16.msra.mxu0 %v471_v2  ;;  %462 = vmatpush3.bf16.msra.mxu1 %v471_v2  ;;  %v481_v12 = vld [vmem:[%s866_s0 + $0x28] sm:$0xff]   ;;  %v483_v14 = vld [vmem:[%s866_s0 + $0x30] sm:$0xff]  }
   0x8   :  { %34 = vst.msk [vmem:[%s865_s3 + $0x70] sm:$0xff] %vm19_vm0, %v486_v1  ;;  %35 = vst.msk [vmem:[%s865_s3 + $0x78] sm:$0xff] %vm19_vm0, %v486_v1  ;;  %425 = vmatprep.subr.bf16.mxu0 %v472_v3  ;;  %455 = vmatprep.subr.bf16.mxu1 %v472_v3  ;;  %v484_v15 = vld [vmem:[%s866_s0 + $0x18] sm:$0xff]   ;;  %v38_v17 = vld [vmem:[%s865_s3 + $0x10] sm:$0xff] }
   0x9   :  { %v485_v16 = vld [vmem:[%s866_s0 + $0x38] sm:$0xff]   ;;  %v36_v19 = vld [vmem:[%s865_s3] sm:$0xff]  ;;  %v37_v29 = vld [vmem:[%s865_s3 + $0x8] sm:$0xff] }
   0xa   :  { %v39_v23 = vld [vmem:[%s865_s3 + $0x18] sm:$0xff]  ;;  %v40_v43 = vld [vmem:[%s865_s3 + $0x20] sm:$0xff]  ;;  %v41_v54 = vld [vmem:[%s865_s3 + $0x28] sm:$0xff] }
   0xb   :  { %426 = vmatpush3.bf16.msra.mxu0 %v472_v3  ;;  %463 = vmatpush3.bf16.msra.mxu1 %v472_v3  ;;  %v42_v41 = vld [vmem:[%s865_s3 + $0x30] sm:$0xff]  ;;  %v690_v45 = vld [vmem:[%s867_s2] ss:$0 sm:$0xff]  ;;  %v43_v48 = vld [vmem:[%s865_s3 + $0x38] sm:$0xff] }
   0xc   :  { %427 = vmatprep.subr.bf16.mxu0 %v473_v4  ;;  %456 = vmatprep.subr.bf16.mxu1 %v473_v4  ;;  %v44_v20 = vld [vmem:[%s865_s3 + $0x40] sm:$0xff]  ;;  %v45_v30 = vld [vmem:[%s865_s3 + $0x48] sm:$0xff] }
   0xd   :  { %v46_v18 = vld [vmem:[%s865_s3 + $0x50] sm:$0xff]  ;;  %v47_v24 = vld [vmem:[%s865_s3 + $0x58] sm:$0xff] }
   0xe   :  { %v48_v44 = vld [vmem:[%s865_s3 + $0x60] sm:$0xff]  ;;  %v49_v55 = vld [vmem:[%s865_s3 + $0x68] sm:$0xff] }
   0xf   :  { %428 = vmatpush3.bf16.msra.mxu0 %v473_v4  ;;  %464 = vmatpush3.bf16.msra.mxu1 %v473_v4  ;;  %v50_v42 = vld [vmem:[%s865_s3 + $0x70] sm:$0xff]  ;;  %v51_v49 = vld [vmem:[%s865_s3 + $0x78] sm:$0xff] }
  0x10   :  { %429 = vmatprep.subr.bf16.mxu0 %v474_v7  ;;  %457 = vmatprep.subr.bf16.mxu1 %v474_v7 }
  0x13   :  { %430 = vmatpush3.bf16.msra.mxu0 %v474_v7  ;;  %465 = vmatpush3.bf16.msra.mxu1 %v474_v7 }
  0x14   :  { %431 = vmatprep.subr.bf16.mxu0 %v475_v8  ;;  %458 = vmatprep.subr.bf16.mxu1 %v475_v8 }
  0x17   :  { %432 = vmatpush3.bf16.msra.mxu0 %v475_v8  ;;  %466 = vmatpush3.bf16.msra.mxu1 %v475_v8 }
  0x18   :  { %433 = vmatprep.subr.bf16.mxu0 %v476_v9  ;;  %459 = vmatprep.subr.bf16.mxu1 %v476_v9 }
  0x1b   :  { %434 = vmatpush3.bf16.msra.mxu0 %v476_v9  ;;  %467 = vmatpush3.bf16.msra.mxu1 %v476_v9 }
  0x1c   :  { %435 = vmatprep.subr.bf16.mxu0 %v477_v10  ;;  %460 = vmatprep.subr.bf16.mxu1 %v477_v10 }
  0x1f   :  { %436 = vmatpush3.bf16.msra.mxu0 %v477_v10  ;;  %468 = vmatpush3.bf16.msra.mxu1 %v477_v10 }
  0x22   :  { %438 = vmatmul.mubr.bf16.vlgmr.msra.gmra.mrb[0].mxu0 %v480_v11  ;;  %446 = vmatmul.mubr.bf16.vlgmr.msra.gmra.mrb[0].mxu1 %v481_v12 }
  0x23   :  { %441 = vmatprep.mubr.bf16.mxu0 %v482_v13  ;;  %449 = vmatprep.mubr.bf16.mxu1 %v483_v14 }
  0x2a   :  { %442 = vmatmul.mubr.bf16.gmra.mrb[4].mxu0 %v484_v15  ;;  %450 = vmatmul.mubr.bf16.gmra.mrb[4].mxu1 %v485_v16 }
  0xf5   :  { %v439_v21 = vpop.f32.mrb[0].mxu0  ;;  %v447_v22 = vpop.f32.mrb[0].mxu1 }
  0xf6   :  { %v279_v25 = vadd.f32 %v439_v21, %v38_v17  ;;  %v287_v26 = vadd.f32 %v447_v22, %v46_v18  ;;  %v214_v27 = vpop.f32.mrb[1].mxu0  ;;  %v246_v28 = vpop.f32.mrb[1].mxu1 }
  0xf7   :  { %v277_v31 = vadd.f32 %v214_v27, %v36_v19  ;;  %v285_v32 = vadd.f32 %v246_v28, %v44_v20  ;;  %v440_v33 = vpop.f32.mrb[2].mxu0  ;;  %v448_v34 = vpop.f32.mrb[2].mxu1 }
  0xf8   :  { %296 = vst.msk [vmem:[%s865_s3 + $0x10] sm:$0xff] %vm19_vm0, %v279_v25  ;;  %304 = vst.msk [vmem:[%s865_s3 + $0x50] sm:$0xff] %vm19_vm0, %v287_v26  ;;  %v280_v35 = vadd.f32 %v440_v33, %v39_v23  ;;  %v288_v36 = vadd.f32 %v448_v34, %v47_v24  ;;  %v217_v37 = vpop.f32.mrb[3].mxu0  ;;  %v249_v38 = vpop.f32.mrb[3].mxu1 }
  0xf9   :  { %294 = vst.msk [vmem:[%s865_s3] sm:$0xff] %vm19_vm0, %v277_v31  ;;  %302 = vst.msk [vmem:[%s865_s3 + $0x40] sm:$0xff] %vm19_vm0, %v285_v32  ;;  %v278_v39 = vadd.f32 %v217_v37, %v37_v29  ;;  %v286_v40 = vadd.f32 %v249_v38, %v45_v30 }
  0xfa   :  { %297 = vst.msk [vmem:[%s865_s3 + $0x18] sm:$0xff] %vm19_vm0, %v280_v35  ;;  %305 = vst.msk [vmem:[%s865_s3 + $0x58] sm:$0xff] %vm19_vm0, %v288_v36 }
  0xfb   :  { %295 = vst.msk [vmem:[%s865_s3 + $0x8] sm:$0xff] %vm19_vm0, %v278_v39  ;;  %303 = vst.msk [vmem:[%s865_s3 + $0x48] sm:$0xff] %vm19_vm0, %v286_v40 }
  0xfd   :  { %v443_v46 = vpop.f32.mrb[4].mxu0  ;;  %v451_v47 = vpop.f32.mrb[4].mxu1 }
  0xfe   :  { %v283_v50 = vadd.f32 %v443_v46, %v42_v41  ;;  %v291_v51 = vadd.f32 %v451_v47, %v50_v42  ;;  %v230_v52 = vpop.f32.mrb[5].mxu0  ;;  %v262_v53 = vpop.f32.mrb[5].mxu1 }
  0xff   :  { %v315_v56 = vld [vmem:[%s865_s3 + $0x10] sm:$0xff]  ;;  %v281_v58 = vadd.f32 %v230_v52, %v40_v43  ;;  %v289_v59 = vadd.f32 %v262_v53, %v48_v44  ;;  %v444_v60 = vpop.f32.mrb[6].mxu0  ;;  %v452_v61 = vpop.f32.mrb[6].mxu1 }
 0x100   :  { %v323_v57 = vld [vmem:[%s865_s3 + $0x50] sm:$0xff]  ;;  %v338_v62 = vadd.f32 %v690_v45, %v315_v56  ;;  %v313_v0 = vld [vmem:[%s865_s3] sm:$0xff]  ;;  %300 = vst.msk [vmem:[%s865_s3 + $0x30] sm:$0xff] %vm19_vm0, %v283_v50  ;;  %308 = vst.msk [vmem:[%s865_s3 + $0x70] sm:$0xff] %vm19_vm0, %v291_v51  ;;  %v284_v2 = vadd.f32 %v444_v60, %v43_v48  ;;  %v292_v3 = vadd.f32 %v452_v61, %v51_v49  ;;  %v233_v4 = vpop.f32.mrb[7].mxu0  ;;  %v265_v5 = vpop.f32.mrb[7].mxu1 }
 0x101   :  { %v346_v63 = vadd.f32 %v690_v45, %v323_v57  ;;  %v321_v1 = vld [vmem:[%s865_s3 + $0x40] sm:$0xff]  ;;  %v336_v6 = vadd.f32 %v690_v45, %v313_v0  ;;  %v316_v8 = vld [vmem:[%s865_s3 + $0x18] sm:$0xff]  ;;  %298 = vst.msk [vmem:[%s865_s3 + $0x20] sm:$0xff] %vm19_vm0, %v281_v58  ;;  %306 = vst.msk [vmem:[%s865_s3 + $0x60] sm:$0xff] %vm19_vm0, %v289_v59  ;;  %v282_v10 = vadd.f32 %v233_v4, %v41_v54 }
 0x102   :  { %v344_v7 = vadd.f32 %v690_v45, %v321_v1  ;;  %v324_v9 = vld [vmem:[%s865_s3 + $0x58] sm:$0xff]  ;;  %v290_v11 = vadd.f32 %v265_v5, %v49_v55  ;;  %v354_v12 = vmax.f32 %v338_v62, 0.0  ;;  %v339_v14 = vadd.f32 %v690_v45, %v316_v8  ;;  %v314_v16 = vld [vmem:[%s865_s3 + $0x8] sm:$0xff]  ;;  %301 = vst.msk [vmem:[%s865_s3 + $0x38] sm:$0xff] %vm19_vm0, %v284_v2  ;;  %309 = vst.msk [vmem:[%s865_s3 + $0x78] sm:$0xff] %vm19_vm0, %v292_v3 }
 0x103   :  { %v362_v13 = vmax.f32 %v346_v63, 0.0  ;;  %v347_v15 = vadd.f32 %v690_v45, %v324_v9  ;;  %v322_v17 = vld [vmem:[%s865_s3 + $0x48] sm:$0xff]  ;;  %v352_v18 = vmax.f32 %v336_v6, 0.0  ;;  %v337_v20 = vadd.f32 %v690_v45, %v314_v16  ;;  %299 = vst.msk [vmem:[%s865_s3 + $0x28] sm:$0xff] %vm19_vm0, %v282_v10 }
 0x104   :  { %v360_v19 = vmax.f32 %v344_v7, 0.0  ;;  %v345_v21 = vadd.f32 %v690_v45, %v322_v17  ;;  %307 = vst.msk [vmem:[%s865_s3 + $0x68] sm:$0xff] %vm19_vm0, %v290_v11  ;;  %370 = vst.msk [vmem:[%s865_s3 + $0x10] sm:$0xff] %vm19_vm0, %v354_v12  ;;  %v355_v22 = vmax.f32 %v339_v14, 0.0 }
 0x105   :  { %378 = vst.msk [vmem:[%s865_s3 + $0x50] sm:$0xff] %vm19_vm0, %v362_v13  ;;  %v363_v23 = vmax.f32 %v347_v15, 0.0  ;;  %368 = vst.msk [vmem:[%s865_s3] sm:$0xff] %vm19_vm0, %v352_v18  ;;  %v353_v24 = vmax.f32 %v337_v20, 0.0 }
 0x106   :  { %376 = vst.msk [vmem:[%s865_s3 + $0x40] sm:$0xff] %vm19_vm0, %v360_v19  ;;  %v361_v25 = vmax.f32 %v345_v21, 0.0  ;;  %371 = vst.msk [vmem:[%s865_s3 + $0x18] sm:$0xff] %vm19_vm0, %v355_v22 }
 0x107   :  { %379 = vst.msk [vmem:[%s865_s3 + $0x58] sm:$0xff] %vm19_vm0, %v363_v23  ;;  %369 = vst.msk [vmem:[%s865_s3 + $0x8] sm:$0xff] %vm19_vm0, %v353_v24  ;;  %v319_v26 = vld [vmem:[%s865_s3 + $0x30] sm:$0xff] }
 0x108   :  { %377 = vst.msk [vmem:[%s865_s3 + $0x48] sm:$0xff] %vm19_vm0, %v361_v25  ;;  %v327_v27 = vld [vmem:[%s865_s3 + $0x70] sm:$0xff]  ;;  %v342_v28 = vadd.f32 %v690_v45, %v319_v26  ;;  %v317_v30 = vld [vmem:[%s865_s3 + $0x20] sm:$0xff] }
 0x109   :  { %v350_v29 = vadd.f32 %v690_v45, %v327_v27  ;;  %v325_v31 = vld [vmem:[%s865_s3 + $0x60] sm:$0xff]  ;;  %v340_v32 = vadd.f32 %v690_v45, %v317_v30  ;;  %v320_v34 = vld [vmem:[%s865_s3 + $0x38] sm:$0xff] }
 0x10a   :  { %v348_v33 = vadd.f32 %v690_v45, %v325_v31  ;;  %v328_v35 = vld [vmem:[%s865_s3 + $0x78] sm:$0xff]  ;;  %v358_v36 = vmax.f32 %v342_v28, 0.0  ;;  %v343_v38 = vadd.f32 %v690_v45, %v320_v34  ;;  %v318_v40 = vld [vmem:[%s865_s3 + $0x28] sm:$0xff] }
 0x10b   :  { %v366_v37 = vmax.f32 %v350_v29, 0.0  ;;  %v351_v39 = vadd.f32 %v690_v45, %v328_v35  ;;  %v326_v41 = vld [vmem:[%s865_s3 + $0x68] sm:$0xff]  ;;  %v356_v42 = vmax.f32 %v340_v32, 0.0  ;;  %v341_v44 = vadd.f32 %v690_v45, %v318_v40 }
 0x10c   :  { %v364_v43 = vmax.f32 %v348_v33, 0.0  ;;  %v349_v46 = vadd.f32 %v690_v45, %v326_v41  ;;  %374 = vst.msk [vmem:[%s865_s3 + $0x30] sm:$0xff] %vm19_vm0, %v358_v36  ;;  %v359_v47 = vmax.f32 %v343_v38, 0.0 }
 0x10d   :  { %382 = vst.msk [vmem:[%s865_s3 + $0x70] sm:$0xff] %vm19_vm0, %v366_v37  ;;  %v367_v48 = vmax.f32 %v351_v39, 0.0  ;;  %372 = vst.msk [vmem:[%s865_s3 + $0x20] sm:$0xff] %vm19_vm0, %v356_v42  ;;  %v357_v45 = vmax.f32 %v341_v44, 0.0 }
 0x10e   :  { %380 = vst.msk [vmem:[%s865_s3 + $0x60] sm:$0xff] %vm19_vm0, %v364_v43  ;;  %v365_v49 = vmax.f32 %v349_v46, 0.0  ;;  %375 = vst.msk [vmem:[%s865_s3 + $0x38] sm:$0xff] %vm19_vm0, %v359_v47 }
 0x10f   :  { %383 = vst.msk [vmem:[%s865_s3 + $0x78] sm:$0xff] %vm19_vm0, %v367_v48  ;;  %373 = vst.msk [vmem:[%s865_s3 + $0x28] sm:$0xff] %vm19_vm0, %v357_v45 }
 0x110   :  { %381 = vst.msk [vmem:[%s865_s3 + $0x68] sm:$0xff] %vm19_vm0, %v365_v49 }

</bundles_post_ra>
